<compile_context>
chip_gen: v5e
topology: v5e:2x2
jax: 0.10.0
libtpu: 0.0.40
codegen_flags: <defaults>
</compile_context>

<pallas_src>
import functools
import math

import numpy as np
import jax
import jax.numpy as jnp
from jax.experimental import pallas as pl
from jax.experimental.pallas import tpu as pltpu


# ----------------------------------------------------------------------------
# Host-side (trace-time) construction of the composed 1-D pooling operators.
# ----------------------------------------------------------------------------
@functools.lru_cache(maxsize=None)
def _composed_pool_matrix(n_in: int, sampling_times: int) -> np.ndarray:
    """Composed 1-D AvgPool(3, stride=2, pad=1, count_include_pad=True) operator."""
    A = np.eye(n_in, dtype=np.float32)
    cur = n_in
    for _ in range(sampling_times):
        n_out = (cur + 2 * 1 - 3) // 2 + 1
        P = np.zeros((n_out, cur), np.float32)
        for o in range(n_out):
            for k in range(3):
                i = 2 * o - 1 + k
                if 0 <= i < cur:
                    P[o, i] = 1.0 / 3.0  # zero padding contributes 0 but still /3
        A = P @ A
        cur = n_out
    return A  # (n_out_final, n_in)


# ----------------------------------------------------------------------------
# Kernel: one grid step processes G images (B*C planes).
# ----------------------------------------------------------------------------
def _input_projection_kernel(x_ref, wt_ref, ah_ref, out_ref):
    # x_ref  : (G*H, W)   flattened rows of G images (lane-dense K = W)
    # wt_ref : (W,  Wo)   composed width-pooling operator (A_W^T), resident
    # ah_ref : (Ho, H)    composed height-pooling operator (f32), resident
    # out_ref: (G, Ho, Wo)
    G = out_ref.shape[0]
    Ho, H = ah_ref.shape
    Wo = wt_ref.shape[1]

    # Stage 1: pool along W.  One big MXU matmul, M = G*H, K = W, N = Wo,
    # f32 accumulation regardless of input dtype.
    t = jnp.dot(x_ref[...], wt_ref[...],
                preferred_element_type=jnp.float32)          # (G*H, Wo) f32
    t = t.reshape(G, H, Wo)

    # Stage 2: pool along H.  Tiny batched contraction per image (FLOPs are
    # ~Wo/W of stage 1), kept in f32 for accuracy.
    ah_b = jnp.broadcast_to(ah_ref[...][None, :, :], (G, Ho, H))
    out = jax.lax.dot_general(
        ah_b, t,
        dimension_numbers=(((2,), (1,)), ((0,), (0,))),
        preferred_element_type=jnp.float32)                   # (G, Ho, Wo)
    out_ref[...] = out.astype(out_ref.dtype)


# ----------------------------------------------------------------------------
# Tile-size selection (VMEM budget + pipelining / megacore considerations).
# ----------------------------------------------------------------------------
def _choose_images_per_step(BC, H, W, Ho, Wo, itemsize):
    # Per-image VMEM: double-buffered input & output + f32 intermediate.
    per_img = 2 * H * W * itemsize + H * Wo * 4 + 2 * Ho * Wo * itemsize
    budget = 8 * 1024 * 1024  # fits under every generation's default scoped VMEM
    g = max(1, min(BC, budget // per_img))
    # Prefer >= 4 grid steps when possible: enables software pipelining and
    # gives v7x's two TensorCores >= 2 programs each on the "parallel" axis.
    if BC >= 2:
        g = min(g, max(1, BC // 4))
    # Sublane alignment: the flat x block is (g*H, W); need g*H % 8 == 0
    # (or a single full-extent block).
    sub = 8 // math.gcd(H, 8)
    g = min(BC, ((g + sub - 1) // sub) * sub)
    if (g * H) % 8 != 0:
        g = BC
    return g


# ----------------------------------------------------------------------------
# Wrapper.
# ----------------------------------------------------------------------------
def input_projection(x_nchw, sampling_times: int):
    """ESPNet InputProjectionA forward: samplingTimes x AvgPool2d(3, 2, 1)."""
    B, C, H, W = x_nchw.shape
    if sampling_times == 0:
        return x_nchw  # empty nn.ModuleList -> identity

    A_H = _composed_pool_matrix(H, sampling_times)  # (Ho, H)
    A_W = _composed_pool_matrix(W, sampling_times)  # (Wo, W)
    Ho, Wo = A_H.shape[0], A_W.shape[0]
    BC = B * C

    # Matmul dtype follows the input: bf16 inputs take the MXU bf16 path
    # (accumulation stays f32 via preferred_element_type); f32 inputs stay f32
    # so the 2e-3 reference tolerance is preserved.
    wt = jnp.asarray(A_W.T, dtype=x_nchw.dtype)      # (W, Wo)
    ah = jnp.asarray(A_H, dtype=jnp.float32)         # (Ho, H), stage 2 stays f32

    x_flat = x_nchw.reshape(BC * H, W)               # contiguous reshape, no transpose

    G = _choose_images_per_step(BC, H, W, Ho, Wo, x_nchw.dtype.itemsize)
    grid = (pl.cdiv(BC, G),)

    itemsize = x_nchw.dtype.itemsize
    cost = pl.CostEstimate(
        flops=2 * BC * H * W * Wo + 2 * BC * Ho * H * Wo,
        transcendentals=0,
        bytes_accessed=(BC * H * W * itemsize + W * Wo * itemsize
                        + Ho * H * 4 + BC * Ho * Wo * itemsize),
    )

    def build(single_buffer_weights: bool):
        if single_buffer_weights:
            # Constant index_map -> block is never re-fetched; one buffer is enough.
            wt_spec = pl.BlockSpec((W, Wo), lambda i: (0, 0),
                                   pipeline_mode=pl.Buffered(1))
            ah_spec = pl.BlockSpec((Ho, H), lambda i: (0, 0),
                                   pipeline_mode=pl.Buffered(1))
        else:
            wt_spec = pl.BlockSpec((W, Wo), lambda i: (0, 0))
            ah_spec = pl.BlockSpec((Ho, H), lambda i: (0, 0))
        return pl.pallas_call(
            _input_projection_kernel,
            out_shape=jax.ShapeDtypeStruct((BC, Ho, Wo), x_nchw.dtype),
            grid_spec=pltpu.PrefetchScalarGridSpec(
                num_scalar_prefetch=0,
                grid=grid,
                in_specs=[
                    pl.BlockSpec((G * H, W), lambda i: (i, 0)),  # rows of G images
                    wt_spec,
                    ah_spec,
                ],
                out_specs=pl.BlockSpec((G, Ho, Wo), lambda i: (i, 0, 0)),
            ),
            compiler_params=pltpu.CompilerParams(
                dimension_semantics=("parallel",),       # independent image tiles
                vmem_limit_bytes=32 * 1024 * 1024),
            cost_estimate=cost,
        )

    try:
        out_flat = build(True)(x_flat, wt, ah)
    except Exception:
        # Fall back to default double-buffered weights if Buffered(1) is rejected
        # by this Pallas version (weights are only a few KB in the separable form).
        out_flat = build(False)(x_flat, wt, ah)

    return out_flat.reshape(B, C, Ho, Wo)            # contiguous reshape, no transpose


# ----------------------------------------------------------------------------
# Pure-JAX reference: repeated AvgPool2d(3, 2, 1), count_include_pad=True.
# ----------------------------------------------------------------------------
def ref_forward(x, sampling_times):
    for _ in range(sampling_times):
        s = jax.lax.reduce_window(
            x, 0.0, jax.lax.add,
            window_dimensions=(1, 1, 3, 3),
            window_strides=(1, 1, 2, 2),
            padding=((0, 0), (0, 0), (1, 1), (1, 1)))
        x = s / 9.0
    return x


if __name__ == "__main__":
    B, C, H, W = 2, 4, 16, 16
    sampling_times = 2            # 16x16 -> 8x8 -> 4x4

    key = jax.random.PRNGKey(0)
    x = jax.random.normal(key, (B, C, H, W), jnp.float32)

    out = input_projection(x, sampling_times)
    out = jax.block_until_ready(out)

    ref = ref_forward(x, sampling_times)
    assert out.shape == ref.shape, (out.shape, ref.shape)
    np.testing.assert_allclose(np.asarray(out), np.asarray(ref), atol=2e-3, rtol=2e-3)
    print("KERNEL_OK")
</pallas_src>

<mosaic_0001>
module attributes {stable_mosaic.version = 11 : i64} {
  func.func @_input_projection_kernel(%arg0: i32, %arg1: memref<32x16xf32, #tpu.memory_space<vmem>>, %arg2: memref<16x4xf32, #tpu.memory_space<vmem>>, %arg3: memref<4x16xf32, #tpu.memory_space<vmem>>, %arg4: memref<2x4x4xf32, #tpu.memory_space<vmem>>) attributes {dimension_semantics = [#tpu.dimension_semantics<parallel>], iteration_bounds = array<i64: 4>, scalar_prefetch = 0 : i64, scratch_operands = 0 : i64, tpu.core_type = #tpu.core_type<tc>, window_params = [{transform_indices = @transform_0, window_bounds = array<i64: 32, 16>}, {pipeline_mode = #tpu.pipeline_mode<synchronous>, transform_indices = @transform_1, window_bounds = array<i64: 16, 4>}, {pipeline_mode = #tpu.pipeline_mode<synchronous>, transform_indices = @transform_2, window_bounds = array<i64: 4, 16>}, {transform_indices = @transform_3, window_bounds = array<i64: 2, 4, 4>}]} {
    %c0 = arith.constant 0 : index
    %c0_0 = arith.constant 0 : index
    %0 = vector.load %arg1[%c0, %c0_0] : memref<32x16xf32, #tpu.memory_space<vmem>>, vector<32x16xf32>
    %c0_1 = arith.constant 0 : index
    %c0_2 = arith.constant 0 : index
    %1 = vector.load %arg2[%c0_1, %c0_2] : memref<16x4xf32, #tpu.memory_space<vmem>>, vector<16x4xf32>
    %cst = arith.constant dense<0.000000e+00> : vector<32x4xf32>
    %2 = tpu.matmul %0, %1, %cst {dimension_numbers = #tpu.dot_dimension_numbers<[1], [0], [0], [1], [0, 0, 1, 1], [], []>} : vector<32x16xf32>, vector<16x4xf32>, vector<32x4xf32> -> vector<32x4xf32>
    %3 = vector.shape_cast %2 : vector<32x4xf32> to vector<2x16x4xf32>
    %c0_3 = arith.constant 0 : index
    %c0_4 = arith.constant 0 : index
    %4 = vector.load %arg3[%c0_3, %c0_4] : memref<4x16xf32, #tpu.memory_space<vmem>>, vector<4x16xf32>
    %5 = vector.shape_cast %4 : vector<4x16xf32> to vector<1x4x16xf32>
    %6 = vector.shape_cast %5 : vector<1x4x16xf32> to vector<1x4x16xf32>
    %7 = vector.broadcast %6 : vector<1x4x16xf32> to vector<2x4x16xf32>
    %cst_5 = arith.constant dense<0.000000e+00> : vector<2x4x4xf32>
    %8 = tpu.matmul %7, %3, %cst_5 {dimension_numbers = #tpu.dot_dimension_numbers<[2], [1], [1], [2], [0, 0, 0, 1, 1, 2], [0], [0]>} : vector<2x4x16xf32>, vector<2x16x4xf32>, vector<2x4x4xf32> -> vector<2x4x4xf32>
    %c0_6 = arith.constant 0 : index
    %c0_7 = arith.constant 0 : index
    %c0_8 = arith.constant 0 : index
    %9 = vector.load %arg4[%c0_6, %c0_7, %c0_8] : memref<2x4x4xf32, #tpu.memory_space<vmem>>, vector<2x4x4xf32>
    tpu.vector_store %arg4[%c0_6, %c0_7, %c0_8], %8 {strides = array<i32>} : memref<2x4x4xf32, #tpu.memory_space<vmem>>, vector<2x4x4xf32>,
    return
  }
  func.func @transform_0(%arg0: i32) -> (i32, i32) {
    %c0_i32 = arith.constant 0 : i32
    %c0_i32_0 = arith.constant 0 : i32
    return %arg0, %c0_i32 : i32, i32
  }
  func.func @transform_1(%arg0: i32) -> (i32, i32) {
    %c0_i32 = arith.constant 0 : i32
    %c0_i32_0 = arith.constant 0 : i32
    %c0_i32_1 = arith.constant 0 : i32
    return %c0_i32, %c0_i32_0 : i32, i32
  }
  func.func @transform_2(%arg0: i32) -> (i32, i32) {
    %c0_i32 = arith.constant 0 : i32
    %c0_i32_0 = arith.constant 0 : i32
    %c0_i32_1 = arith.constant 0 : i32
    return %c0_i32, %c0_i32_0 : i32, i32
  }
  func.func @transform_3(%arg0: i32) -> (i32, i32, i32) {
    %c0_i32 = arith.constant 0 : i32
    %c0_i32_0 = arith.constant 0 : i32
    %c0_i32_1 = arith.constant 0 : i32
    return %arg0, %c0_i32, %c0_i32_0 : i32, i32, i32
  }
}

module attributes {stable_mosaic.version = 11 : i64} {
  func.func @_input_projection_kernel(%arg0: i32, %arg1: memref<32x16xf32, #tpu.memory_space<vmem>>, %arg2: memref<16x4xf32, #tpu.memory_space<vmem>>, %arg3: memref<4x16xf32, #tpu.memory_space<vmem>>, %arg4: memref<2x4x4xf32, #tpu.memory_space<vmem>>) attributes {dimension_semantics = [#tpu.dimension_semantics<parallel>], iteration_bounds = array<i64: 4>, scalar_prefetch = 0 : i64, scratch_operands = 0 : i64, tpu.core_type = #tpu.core_type<tc>, window_params = [{transform_indices = @transform_0, window_bounds = array<i64: 32, 16>}, {pipeline_mode = #tpu.pipeline_mode<synchronous>, transform_indices = @transform_1, window_bounds = array<i64: 16, 4>}, {pipeline_mode = #tpu.pipeline_mode<synchronous>, transform_indices = @transform_2, window_bounds = array<i64: 4, 16>}, {transform_indices = @transform_3, window_bounds = array<i64: 2, 4, 4>}]} {
    %c0 = arith.constant 0 : index
    %c0_0 = arith.constant 0 : index
    %0 = vector.load %arg1[%c0, %c0_0] : memref<32x16xf32, #tpu.memory_space<vmem>>, vector<32x16xf32>
    %c0_1 = arith.constant 0 : index
    %c0_2 = arith.constant 0 : index
    %1 = vector.load %arg2[%c0_1, %c0_2] : memref<16x4xf32, #tpu.memory_space<vmem>>, vector<16x4xf32>
    %cst = arith.constant dense<0.000000e+00> : vector<32x4xf32>
    %2 = tpu.matmul %0, %1, %cst {dimension_numbers = #tpu.dot_dimension_numbers<[1], [0], [0], [1], [0, 0, 1, 1], [], []>} : vector<32x16xf32>, vector<16x4xf32>, vector<32x4xf32> -> vector<32x4xf32>
    %3 = vector.shape_cast %2 : vector<32x4xf32> to vector<2x16x4xf32>
    %c0_3 = arith.constant 0 : index
    %c0_4 = arith.constant 0 : index
    %4 = vector.load %arg3[%c0_3, %c0_4] : memref<4x16xf32, #tpu.memory_space<vmem>>, vector<4x16xf32>
    %5 = vector.shape_cast %4 : vector<4x16xf32> to vector<1x4x16xf32>
    %6 = vector.shape_cast %5 : vector<1x4x16xf32> to vector<1x4x16xf32>
    %7 = vector.broadcast %6 : vector<1x4x16xf32> to vector<2x4x16xf32>
    %cst_5 = arith.constant dense<0.000000e+00> : vector<2x4x4xf32>
    %8 = tpu.matmul %7, %3, %cst_5 {dimension_numbers = #tpu.dot_dimension_numbers<[2], [1], [1], [2], [0, 0, 0, 1, 1, 2], [0], [0]>} : vector<2x4x16xf32>, vector<2x16x4xf32>, vector<2x4x4xf32> -> vector<2x4x4xf32>
    %c0_6 = arith.constant 0 : index
    %c0_7 = arith.constant 0 : index
    %c0_8 = arith.constant 0 : index
    %9 = vector.load %arg4[%c0_6, %c0_7, %c0_8] : memref<2x4x4xf32, #tpu.memory_space<vmem>>, vector<2x4x4xf32>
    tpu.vector_store %arg4[%c0_6, %c0_7, %c0_8], %8 {strides = array<i32>} : memref<2x4x4xf32, #tpu.memory_space<vmem>>, vector<2x4x4xf32>,
    return
  }
  func.func @transform_0(%arg0: i32) -> (i32, i32) {
    %c0_i32 = arith.constant 0 : i32
    %c0_i32_0 = arith.constant 0 : i32
    return %arg0, %c0_i32 : i32, i32
  }
  func.func @transform_1(%arg0: i32) -> (i32, i32) {
    %c0_i32 = arith.constant 0 : i32
    %c0_i32_0 = arith.constant 0 : i32
    %c0_i32_1 = arith.constant 0 : i32
    return %c0_i32, %c0_i32_0 : i32, i32
  }
  func.func @transform_2(%arg0: i32) -> (i32, i32) {
    %c0_i32 = arith.constant 0 : i32
    %c0_i32_0 = arith.constant 0 : i32
    %c0_i32_1 = arith.constant 0 : i32
    return %c0_i32, %c0_i32_0 : i32, i32
  }
  func.func @transform_3(%arg0: i32) -> (i32, i32, i32) {
    %c0_i32 = arith.constant 0 : i32
    %c0_i32_0 = arith.constant 0 : i32
    %c0_i32_1 = arith.constant 0 : i32
    return %arg0, %c0_i32, %c0_i32_0 : i32, i32, i32
  }
}

</mosaic_0001>

<bundles_post_ra>
// kernel: tpu_custom_call.1
= control target key start
LH: loop header
LB: loop body
LE: loop exit
PB: predicated region body
PF: predicated region fallthrough
CT: control target
= control target key end

     0   :  { %s380_s12 = smov 0   ;;  %s416_s0 = inlined_call_operand.vmem [shape: f32[128,16], index: 0, kind: input, shape index: {}]   ;;  %s417_s1 = inlined_call_operand.vmem [shape: f32[16,4], index: 1, kind: input, shape index: {}]   ;;  %s418_s2 = inlined_call_operand.vmem [shape: f32[4,16], index: 2, kind: input, shape index: {}]   ;;  %s419_s3 = inlined_call_operand.vmem [shape: f32[8,4,4], index: 3, kind: output, shape index: {}]  }
   0x1 LB: > { %s325_s13 = sadd.s32 4294967295, %s358_s12   ;;  %p329_p0 = scmp.ge.s32.totalorder %s358_s12, 1  ;;  %s358_s12 = sphi %s380_s12, %s13_s12  }
   0x2   : > { %p138_p1 = scmp.lt.s32.totalorder %s358_s12, 5 }
   0x4   : > { %p139_p2 = pnand %p329_p0, %p138_p1 }
   0x5   : > { %s330_s18 = sshll.u32 (!%p139_p2), %s325_s13, 2  ;;  %s332_s25 = sshll.u32 (!%p139_p2), %s325_s13, 1 }
   0x6   : > { %142 = sbr.rel (%p139_p2) target bundleno = 291 (0x123), region = 32  ;;  %p163_p3 = scmp.lt.s32.totalorder (!%p139_p2), %s330_s18, 15 }
   0x7   : > { %p169_p4 = scmp.lt.s32.totalorder (!%p139_p2), %s332_s25, 7 }
   0xb   : > { %v179_v0 = vld [vmem:[%s417_s1 + $0x8] sm:$0xff]  ;;  %v178_v1 = vld [vmem:[%s417_s1] sm:$0xff]  ;;  %s421_s18 = smov (!%p163_p3, %s330_s18), 15  ;;  %vm180_vm0 = vcmask 130048   ;;  %s423_s25 = smov (!%p169_p4, %s332_s25), 7  ;;  %vm266_vm1 = vcmask 27648  }
   0xc   : > { %342 = vmatpush.msra.mxu3 %v179_v0  ;;  %207 = vmatpush.msra.mxu0 %v179_v0  ;;  %s331_s19 = sshll.u32 %s421_s18, 3  ;;  %v222_v9 = vld [vmem:[%s418_s2] sm:$0xf]  ;;  %s333_s26 = sshll.u32 %s423_s25, 2 }
   0xd   : > { %s166_s22 = scalar_lea.vmem %s416_s0, %s331_s19  ;;  %s172_s29 = scalar_lea.vmem %s419_s3, %s333_s26 }
   0xe   : > { %343 = vmatpush.msra.mxu3 %v178_v1  ;;  %208 = vmatpush.msra.mxu0 %v178_v1  ;;  %v176_v2 = vld [vmem:[%s166_s22 + $0x10] sm:$0xff]  ;;  %v174_v3 = vld [vmem:[%s166_s22] sm:$0xff]  ;;  %v177_v4 = vld [vmem:[%s166_s22 + $0x18] sm:$0xff] }
   0xf   : > { %336 = vmatmul.msk.f32.vlgmr.msra.gmra.mxu3 %vm180_vm0, %v176_v2  ;;  %334 = vmatmul.msk.f32.vlgmr.msra.gmra.mxu0 %vm180_vm0, %v174_v3  ;;  %v175_v5 = vld [vmem:[%s166_s22 + $0x8] sm:$0xff] }
  0x17   : > { %337 = vmatmul.msk.f32.gmra.mxu3 %vm180_vm0, %v177_v4  ;;  %335 = vmatmul.msk.f32.gmra.mxu0 %vm180_vm0, %v175_v5 }
  0x8c   : > { %v210_v6 = vpop.f32.mrf.mxu0 }
  0x92   : > { %v216_v7 = vpop.f32.mrf.mxu3 }
  0x94   : > { %v213_v8 = vpop.f32.mrf.mxu0 }
  0x95   : > { %240 = vmatpush.msra.mxu1 %v213_v8 }
  0x97   : > { %241 = vmatpush.msra.mxu1 %v210_v6 }
  0x98   : > { %338 = vmatmul.msk.f32.vlgmr.msra.gmra.mxu1 %vm180_vm0, %v222_v9 }
  0x9a   : > { %v219_v10 = vpop.f32.mrf.mxu3 }
  0x9b   : > { %260 = vmatpush.msra.mxu2 %v219_v10 }
  0x9d   : > { %261 = vmatpush.msra.mxu2 %v216_v7 }
  0x9e   : > { %339 = vmatmul.msk.f32.vlgmr.msra.gmra.mxu2 %vm180_vm0, %v222_v9 }
 0x115   : > { %v243_v11 = vpop.f32.mrf.mxu1 }
 0x116   : > { %267 = vst.msk [vmem:[%s172_s29] sm:$0xf] %vm266_vm1, %v243_v11 }
 0x121   : > { %v263_v12 = vpop.f32.mrf.mxu2 }
 0x122   : > { %268 = vst.msk [vmem:[%s172_s29 + $0x4] sm:$0xf] %vm266_vm1, %v263_v12 }
 0x123 PF: > { %s13_s12 = sadd.s32 1, %s358_s12  }
 0x124   : > { %p10_p5 = scmp.ge.s32.totalorder %s13_s12, 6  }
 0x126   :  { %12 = sbr.rel (!%p10_p5) target bundleno = 1 (0x1), region = 62 }

// kernel: tpu_custom_call.1
= control target key start
LH: loop header
LB: loop body
LE: loop exit
PB: predicated region body
PF: predicated region fallthrough
CT: control target
= control target key end

     0   :  { %s380_s12 = smov 0   ;;  %s416_s0 = inlined_call_operand.vmem [shape: f32[128,16], index: 0, kind: input, shape index: {}]   ;;  %s417_s1 = inlined_call_operand.vmem [shape: f32[16,4], index: 1, kind: input, shape index: {}]   ;;  %s418_s2 = inlined_call_operand.vmem [shape: f32[4,16], index: 2, kind: input, shape index: {}]   ;;  %s419_s3 = inlined_call_operand.vmem [shape: f32[8,4,4], index: 3, kind: output, shape index: {}]  }
   0x1 LB: > { %s325_s13 = sadd.s32 4294967295, %s358_s12   ;;  %p329_p0 = scmp.ge.s32.totalorder %s358_s12, 1  ;;  %s358_s12 = sphi %s380_s12, %s13_s12  }
   0x2   : > { %p138_p1 = scmp.lt.s32.totalorder %s358_s12, 5 }
   0x4   : > { %p139_p2 = pnand %p329_p0, %p138_p1 }
   0x5   : > { %s330_s18 = sshll.u32 (!%p139_p2), %s325_s13, 2  ;;  %s332_s25 = sshll.u32 (!%p139_p2), %s325_s13, 1 }
   0x6   : > { %142 = sbr.rel (%p139_p2) target bundleno = 291 (0x123), region = 32  ;;  %p163_p3 = scmp.lt.s32.totalorder (!%p139_p2), %s330_s18, 15 }
   0x7   : > { %p169_p4 = scmp.lt.s32.totalorder (!%p139_p2), %s332_s25, 7 }
   0xb   : > { %v179_v0 = vld [vmem:[%s417_s1 + $0x8] sm:$0xff]  ;;  %v178_v1 = vld [vmem:[%s417_s1] sm:$0xff]  ;;  %s421_s18 = smov (!%p163_p3, %s330_s18), 15  ;;  %vm180_vm0 = vcmask 130048   ;;  %s423_s25 = smov (!%p169_p4, %s332_s25), 7  ;;  %vm266_vm1 = vcmask 27648  }
   0xc   : > { %342 = vmatpush.msra.mxu3 %v179_v0  ;;  %207 = vmatpush.msra.mxu0 %v179_v0  ;;  %s331_s19 = sshll.u32 %s421_s18, 3  ;;  %v222_v9 = vld [vmem:[%s418_s2] sm:$0xf]  ;;  %s333_s26 = sshll.u32 %s423_s25, 2 }
   0xd   : > { %s166_s22 = scalar_lea.vmem %s416_s0, %s331_s19  ;;  %s172_s29 = scalar_lea.vmem %s419_s3, %s333_s26 }
   0xe   : > { %343 = vmatpush.msra.mxu3 %v178_v1  ;;  %208 = vmatpush.msra.mxu0 %v178_v1  ;;  %v176_v2 = vld [vmem:[%s166_s22 + $0x10] sm:$0xff]  ;;  %v174_v3 = vld [vmem:[%s166_s22] sm:$0xff]  ;;  %v177_v4 = vld [vmem:[%s166_s22 + $0x18] sm:$0xff] }
   0xf   : > { %336 = vmatmul.msk.f32.vlgmr.msra.gmra.mxu3 %vm180_vm0, %v176_v2  ;;  %334 = vmatmul.msk.f32.vlgmr.msra.gmra.mxu0 %vm180_vm0, %v174_v3  ;;  %v175_v5 = vld [vmem:[%s166_s22 + $0x8] sm:$0xff] }
  0x17   : > { %337 = vmatmul.msk.f32.gmra.mxu3 %vm180_vm0, %v177_v4  ;;  %335 = vmatmul.msk.f32.gmra.mxu0 %vm180_vm0, %v175_v5 }
  0x8c   : > { %v210_v6 = vpop.f32.mrf.mxu0 }
  0x92   : > { %v216_v7 = vpop.f32.mrf.mxu3 }
  0x94   : > { %v213_v8 = vpop.f32.mrf.mxu0 }
  0x95   : > { %240 = vmatpush.msra.mxu1 %v213_v8 }
  0x97   : > { %241 = vmatpush.msra.mxu1 %v210_v6 }
  0x98   : > { %338 = vmatmul.msk.f32.vlgmr.msra.gmra.mxu1 %vm180_vm0, %v222_v9 }
  0x9a   : > { %v219_v10 = vpop.f32.mrf.mxu3 }
  0x9b   : > { %260 = vmatpush.msra.mxu2 %v219_v10 }
  0x9d   : > { %261 = vmatpush.msra.mxu2 %v216_v7 }
  0x9e   : > { %339 = vmatmul.msk.f32.vlgmr.msra.gmra.mxu2 %vm180_vm0, %v222_v9 }
 0x115   : > { %v243_v11 = vpop.f32.mrf.mxu1 }
 0x116   : > { %267 = vst.msk [vmem:[%s172_s29] sm:$0xf] %vm266_vm1, %v243_v11 }
 0x121   : > { %v263_v12 = vpop.f32.mrf.mxu2 }
 0x122   : > { %268 = vst.msk [vmem:[%s172_s29 + $0x4] sm:$0xf] %vm266_vm1, %v263_v12 }
 0x123 PF: > { %s13_s12 = sadd.s32 1, %s358_s12  }
 0x124   : > { %p10_p5 = scmp.ge.s32.totalorder %s13_s12, 6  }
 0x126   :  { %12 = sbr.rel (!%p10_p5) target bundleno = 1 (0x1), region = 62 }

</bundles_post_ra>
